<compile_context>
chip_gen: v5e
topology: v5e:2x2
jax: 0.10.0
libtpu: 0.0.40
codegen_flags: <defaults>
</compile_context>

<pallas_src>
import functools

import jax
import jax.numpy as jnp
from jax import lax
from jax.experimental import pallas as pl
from jax.experimental.pallas import tpu as pltpu


def gcn_kernel(x_ref, w_ref, b_ref, out_ref, acc_ref, *, rows_total, mask_rows):
    # x_ref:   (TILE_G, TILE_R, L)  lane-densified node representations
    # w_ref:   (C, L)               effective linear weight (PyTorch layout, lane-tiled)
    # b_ref:   (1, C)               bias
    # out_ref: (TILE_G, C)
    # acc_ref: (TILE_G, L)          f32 running node-sum (VMEM scratch)
    t = pl.program_id(1)

    @pl.when(t == 0)
    def _init():
        acc_ref[...] = jnp.zeros_like(acc_ref)

    x = x_ref[...].astype(jnp.float32)
    if mask_rows:
        # Ragged last node tile: zero the rows past rows_total (NaN-safe select,
        # since out-of-bounds block contents are unspecified).
        tile_r = x_ref.shape[1]
        row_ids = lax.broadcasted_iota(jnp.int32, (tile_r, 1), 0)
        valid = (row_ids + t * tile_r) < rows_total
        x = jnp.where(valid[None, :, :], x, 0.0)
    acc_ref[...] += jnp.sum(x, axis=1)

    @pl.when(t == pl.num_programs(1) - 1)
    def _finalize():
        # (TILE_G, L) x (C, L) contracted on L -> (TILE_G, C).  When the input
        # is lane-packed, w_ref is the lane-tiled weight, so this contraction
        # simultaneously folds the packed lanes and applies the linear layer.
        y = lax.dot_general(
            acc_ref[...], w_ref[...].astype(jnp.float32),
            dimension_numbers=(((1,), (1,)), ((), ())),
            preferred_element_type=jnp.float32)
        y = y + b_ref[...].astype(jnp.float32)
        out_ref[...] = jnp.maximum(y, 0.0).astype(out_ref.dtype)   # ReLU


def _round_down8(v):
    return max(8, (v // 8) * 8)


def gcn_forward(node_reps, weight, bias, *, tile_g=32, tile_rows=None):
    """Batched GCN forward.

    node_reps: (G, N, D) stacked per-graph node representations (f32 or bf16).
    weight:    (C, D)    PyTorch nn.Linear weight (kept in native layout).
    bias:      (C,)      nn.Linear bias.
    Returns:   (G, C)    ReLU(sum_over_nodes @ W^T + b); row g == the module's
               (1, C) output for graph g.
    """
    g, n, d = node_reps.shape
    c, d_w = weight.shape
    assert d_w == d and bias.shape == (c,)

    # ---- Lane-densify the node axis when it is a free, contiguous reshape.
    if d <= 128 and 128 % d == 0 and (n * d) % 128 == 0:
        pack = 128 // d
        lanes = 128
        rows = (n * d) // 128
        x = node_reps.reshape(g, rows, lanes)                  # metadata-only
        w_eff = jnp.tile(weight, (1, pack)) if pack > 1 else weight   # (C, 128)
    else:
        pack, lanes, rows = 1, d, n
        x = node_reps
        w_eff = weight

    # ---- Graph tile: multiple of 8 (sublane-aligned output stores) or full G.
    if g <= 8:
        tg = g
    else:
        tg = _round_down8(min(tile_g, g))
        if g >= 16:
            # v7x megacore: keep >= 2 graph blocks so both TensorCores get work.
            tg = min(tg, _round_down8(g // 2))

    # ---- Node-row tile: target ~4 MiB per streamed x buffer.
    itemsize = jnp.dtype(x.dtype).itemsize
    if tile_rows is None:
        tile_rows = (4 * 1024 * 1024) // max(1, tg * lanes * itemsize)
    tr = min(int(tile_rows), rows)
    if tr < rows:
        tr = _round_down8(tr)
        if tr >= rows:
            tr = rows
    mask_rows = (rows % tr) != 0

    bias2d = bias.reshape(1, c)   # metadata-only reshape

    bytes_accessed = (x.size * itemsize
                      + w_eff.size * jnp.dtype(w_eff.dtype).itemsize
                      + bias.size * jnp.dtype(bias.dtype).itemsize
                      + g * c * 4)
    cost = pl.CostEstimate(flops=int(2 * g * n * d + 2 * g * d * c),
                           transcendentals=0,
                           bytes_accessed=int(bytes_accessed))

    kernel = functools.partial(gcn_kernel, rows_total=rows, mask_rows=mask_rows)

    out = pl.pallas_call(
        kernel,
        out_shape=jax.ShapeDtypeStruct((g, c), jnp.float32),
        grid_spec=pltpu.PrefetchScalarGridSpec(
            num_scalar_prefetch=0,
            grid=(pl.cdiv(g, tg), pl.cdiv(rows, tr)),          # reduction axis last
            in_specs=[
                pl.BlockSpec((tg, tr, lanes), lambda gi, ti: (gi, ti, 0)),
                pl.BlockSpec((c, lanes), lambda gi, ti: (0, 0)),
                pl.BlockSpec((1, c), lambda gi, ti: (0, 0)),
            ],
            out_specs=pl.BlockSpec((tg, c), lambda gi, ti: (gi, 0)),
            scratch_shapes=[pltpu.VMEM((tg, lanes), jnp.float32)],
        ),
        compiler_params=pltpu.CompilerParams(
            dimension_semantics=("parallel", "arbitrary")),
        cost_estimate=cost,
    )(x, w_eff, bias2d)

    return out


if __name__ == "__main__":
    # Small deterministic setup consistent with the module:
    #   num_output_classes = 4, embedding_dim = 32, 8 graphs x 60 nodes each.
    # N=60 makes the lane-packed row count (60*32/128 = 15) non-divisible by
    # the node tile, exercising both the streaming reduction and the in-kernel
    # ragged-tail masking (no host-side padding anywhere).
    num_output_classes = 4
    embedding_dim = 32
    num_graphs = 8
    num_nodes = 60

    key = jax.random.PRNGKey(0)
    k_x, k_w, k_b = jax.random.split(key, 3)

    node_reps = jax.random.normal(
        k_x, (num_graphs, num_nodes, embedding_dim), dtype=jnp.float32)

    # nn.Linear(embedding_dim, num_output_classes) params, PyTorch-style
    # uniform(-1/sqrt(D), 1/sqrt(D)) init, kept in PyTorch (C, D) layout.
    bound = 1.0 / (embedding_dim ** 0.5)
    weight = jax.random.uniform(k_w, (num_output_classes, embedding_dim),
                                minval=-bound, maxval=bound, dtype=jnp.float32)
    bias = jax.random.uniform(k_b, (num_output_classes,),
                              minval=-bound, maxval=bound, dtype=jnp.float32)

    # tile_rows=8 exercises the multi-step streaming reduction (2 node tiles,
    # the second one partially masked); production runs use the ~4 MiB default.
    out = gcn_forward(node_reps, weight, bias, tile_rows=8)
    out = jax.block_until_ready(out)

    # Pure-JAX reference of the same forward semantics (one row per graph).
    ref = jnp.maximum(node_reps.sum(axis=1) @ weight.T + bias[None, :], 0.0)
    assert out.shape == (num_graphs, num_output_classes)
    assert jnp.allclose(out, ref, atol=1e-5, rtol=1e-5)

    print("KERNEL_OK")
</pallas_src>

<mosaic_0001>
module attributes {stable_mosaic.version = 11 : i64} {
  func.func @gcn_kernel(%arg0: i32, %arg1: i32, %arg2: memref<8x8x128xf32, #tpu.memory_space<vmem>>, %arg3: memref<4x128xf32, #tpu.memory_space<vmem>>, %arg4: memref<1x4xf32, #tpu.memory_space<vmem>>, %arg5: memref<8x4xf32, #tpu.memory_space<vmem>>, %arg6: memref<8x128xf32, #tpu.memory_space<vmem>>) attributes {dimension_semantics = [#tpu.dimension_semantics<parallel>, #tpu.dimension_semantics<arbitrary>], iteration_bounds = array<i64: 1, 2>, scalar_prefetch = 0 : i64, scratch_operands = 1 : i64, tpu.core_type = #tpu.core_type<tc>, window_params = [{transform_indices = @transform_0, window_bounds = array<i64: 8, 8, 128>}, {pipeline_mode = #tpu.pipeline_mode<synchronous>, transform_indices = @transform_1, window_bounds = array<i64: 4, 128>}, {pipeline_mode = #tpu.pipeline_mode<synchronous>, transform_indices = @transform_2, window_bounds = array<i64: 1, 4>}, {transform_indices = @transform_3, window_bounds = array<i64: 8, 4>}]} {
    %c0_i32 = arith.constant 0 : i32
    %0 = arith.cmpi eq, %arg1, %c0_i32 : i32
    %1 = arith.extui %0 : i1 to i32
    %c0_i32_0 = arith.constant 0 : i32
    %2 = arith.cmpi ne, %1, %c0_i32_0 : i32
    scf.if %2 {
      %cst_9 = arith.constant 0.000000e+00 : f32
      %22 = vector.broadcast %cst_9 : f32 to vector<8x128xf32>
      %c0_10 = arith.constant 0 : index
      %c0_11 = arith.constant 0 : index
      %23 = vector.load %arg6[%c0_10, %c0_11] : memref<8x128xf32, #tpu.memory_space<vmem>>, vector<8x128xf32>
      tpu.vector_store %arg6[%c0_10, %c0_11], %22 {strides = array<i32>} : memref<8x128xf32, #tpu.memory_space<vmem>>, vector<8x128xf32>,
    } else {
    }
    %c0 = arith.constant 0 : index
    %c0_1 = arith.constant 0 : index
    %c0_2 = arith.constant 0 : index
    %3 = vector.load %arg2[%c0, %c0_1, %c0_2] : memref<8x8x128xf32, #tpu.memory_space<vmem>>, vector<8x8x128xf32>
    %4 = tpu.iota {dimensions = array<i32: 0>} : vector<8x1xi32>
    %c8_i32 = arith.constant 8 : i32
    %5 = arith.muli %arg1, %c8_i32 : i32
    %6 = vector.broadcast %5 : i32 to vector<8x1xi32>
    %7 = arith.addi %4, %6 : vector<8x1xi32>
    %c15_i32 = arith.constant 15 : i32
    %8 = vector.broadcast %c15_i32 : i32 to vector<8x1xi32>
    %9 = arith.cmpi slt, %7, %8 : vector<8x1xi32>
    %10 = vector.shape_cast %9 : vector<8x1xi1> to vector<1x8x1xi1>
    %cst = arith.constant 0.000000e+00 : f32
    %11 = vector.shape_cast %10 : vector<1x8x1xi1> to vector<1x8x1xi1>
    %12 = vector.broadcast %11 : vector<1x8x1xi1> to vector<8x8x128xi1>
    %13 = vector.broadcast %cst : f32 to vector<8x8x128xf32>
    %14 = arith.select %12, %3, %13 : vector<8x8x128xi1>, vector<8x8x128xf32>
    %c0_3 = arith.constant 0 : index
    %c0_4 = arith.constant 0 : index
    %15 = vector.load %arg6[%c0_3, %c0_4] : memref<8x128xf32, #tpu.memory_space<vmem>>, vector<8x128xf32>
    %cst_5 = arith.constant dense<0.000000e+00> : vector<8x128xf32>
    %16 = vector.multi_reduction <add>, %14, %cst_5 [1] : vector<8x8x128xf32> to vector<8x128xf32>
    %17 = arith.addf %15, %16 : vector<8x128xf32>
    %c0_6 = arith.constant 0 : index
    %c0_7 = arith.constant 0 : index
    %18 = vector.load %arg6[%c0_6, %c0_7] : memref<8x128xf32, #tpu.memory_space<vmem>>, vector<8x128xf32>
    tpu.vector_store %arg6[%c0_6, %c0_7], %17 {strides = array<i32>} : memref<8x128xf32, #tpu.memory_space<vmem>>, vector<8x128xf32>,
    %c1_i32 = arith.constant 1 : i32
    %19 = arith.cmpi eq, %arg1, %c1_i32 : i32
    %20 = arith.extui %19 : i1 to i32
    %c0_i32_8 = arith.constant 0 : i32
    %21 = arith.cmpi ne, %20, %c0_i32_8 : i32
    scf.if %21 {
      %c0_9 = arith.constant 0 : index
      %c0_10 = arith.constant 0 : index
      %22 = vector.load %arg6[%c0_9, %c0_10] : memref<8x128xf32, #tpu.memory_space<vmem>>, vector<8x128xf32>
      %c0_11 = arith.constant 0 : index
      %c0_12 = arith.constant 0 : index
      %23 = vector.load %arg3[%c0_11, %c0_12] : memref<4x128xf32, #tpu.memory_space<vmem>>, vector<4x128xf32>
      %cst_13 = arith.constant dense<0.000000e+00> : vector<8x4xf32>
      %24 = tpu.matmul %22, %23, %cst_13 {dimension_numbers = #tpu.dot_dimension_numbers<[1], [1], [0], [0], [0, 0, 1, 0], [], []>} : vector<8x128xf32>, vector<4x128xf32>, vector<8x4xf32> -> vector<8x4xf32>
      %c0_14 = arith.constant 0 : index
      %c0_15 = arith.constant 0 : index
      %25 = vector.load %arg4[%c0_14, %c0_15] : memref<1x4xf32, #tpu.memory_space<vmem>>, vector<1x4xf32>
      %26 = vector.broadcast %25 : vector<1x4xf32> to vector<8x4xf32>
      %27 = arith.addf %24, %26 : vector<8x4xf32>
      %cst_16 = arith.constant 0.000000e+00 : f32
      %28 = vector.broadcast %cst_16 : f32 to vector<8x4xf32>
      %29 = arith.maximumf %27, %28 : vector<8x4xf32>
      %c0_17 = arith.constant 0 : index
      %c0_18 = arith.constant 0 : index
      %30 = vector.load %arg5[%c0_17, %c0_18] : memref<8x4xf32, #tpu.memory_space<vmem>>, vector<8x4xf32>
      tpu.vector_store %arg5[%c0_17, %c0_18], %29 {strides = array<i32>} : memref<8x4xf32, #tpu.memory_space<vmem>>, vector<8x4xf32>,
    } else {
    }
    return
  }
  func.func @transform_0(%arg0: i32, %arg1: i32) -> (i32, i32, i32) {
    %c0_i32 = arith.constant 0 : i32
    %c0_i32_0 = arith.constant 0 : i32
    return %arg0, %arg1, %c0_i32 : i32, i32, i32
  }
  func.func @transform_1(%arg0: i32, %arg1: i32) -> (i32, i32) {
    %c0_i32 = arith.constant 0 : i32
    %c0_i32_0 = arith.constant 0 : i32
    %c0_i32_1 = arith.constant 0 : i32
    return %c0_i32, %c0_i32_0 : i32, i32
  }
  func.func @transform_2(%arg0: i32, %arg1: i32) -> (i32, i32) {
    %c0_i32 = arith.constant 0 : i32
    %c0_i32_0 = arith.constant 0 : i32
    %c0_i32_1 = arith.constant 0 : i32
    return %c0_i32, %c0_i32_0 : i32, i32
  }
  func.func @transform_3(%arg0: i32, %arg1: i32) -> (i32, i32) {
    %c0_i32 = arith.constant 0 : i32
    %c0_i32_0 = arith.constant 0 : i32
    return %arg0, %c0_i32 : i32, i32
  }
}

</mosaic_0001>

<bundles_post_ra>
// kernel: tpu_custom_call.1
= control target key start
LH: loop header
LB: loop body
LE: loop exit
PB: predicated region body
PF: predicated region fallthrough
CT: control target
= control target key end

     0   :  { %s569_s12 = smov 0   ;;  %s571_s13 = smov 0   ;;  %s644_s0 = inlined_call_operand.vmem [shape: f32[8,15,128], index: 0, kind: input, shape index: {}]   ;;  %s645_s1 = inlined_call_operand.vmem [shape: f32[4,128], index: 1, kind: input, shape index: {}]   ;;  %s646_s2 = inlined_call_operand.vmem [shape: f32[1,4], index: 2, kind: input, shape index: {}]   ;;  %s647_s3 = inlined_call_operand.vmem [shape: f32[8,4], index: 3, kind: output, shape index: {}]  }
   0x1   :  { %s573_s14 = smov 0   ;;  %s575_s15 = smov 0  }
   0x2   :  { %s577_s16 = smov 0  }
   0x3 LB: > { %s22_s17 = sadd.s32 1, %s542_s15  ;;  %p41_p1 = scmp.ne.s32.totalorder %s534_s13, %s530_s12  ;;  %s546_s16 = sphi %s577_s16, %s13_s16   ;;  %s542_s15 = sphi %s575_s15, %s651_s15   ;;  %s538_s14 = sphi %s573_s14, %s650_s14   ;;  %s534_s13 = sphi %s571_s13, %s649_s13   ;;  %s530_s12 = sphi %s569_s12, %s648_s12  }
   0x4   : > { %p23_p0 = scmp.ge.s32.totalorder %s22_s17, 2  ;;  %p42_p2 = scmp.eq.s32.totalorder %s546_s16, 0 }
   0x5   : > { %s34_s19 = sadd.s32 1, %s534_s13  ;;  %p455_p5 = scmp.ge.s32.totalorder %s546_s16, 2 }
   0x6   : > { %s653_s17 = smov (%p23_p0, %s22_s17), 0  ;;  %p43_p3 = por %p42_p2, %p41_p1 }
   0x7   : > { %s30_s18 = ssub.s32 %s542_s15, %s653_s17  ;;  %141 = sbr.rel (%p455_p5) target bundleno = 24 (0x18), region = 24 }
   0x8   : > { %p32_p4 = scmp.eq.s32.totalorder %s30_s18, 0 }
   0xa   : > { %s604_s20 = scalar_select %p32_p4, %s534_s13, %s34_s19  }
   0xc   : > { %144 = sbr.rel (!%p43_p3) target bundleno = 24 (0x18), region = 28  ;;  %s146_s21 = sand.u32 (%p43_p3), 1, %s534_s13  }
   0xd   : > { %s457_s22 = sshll.u32 (%p43_p3), %s542_s15, 3  ;;  %s456_s23 = sshll.u32 (%p43_p3), %s146_s21, 6 }
   0xe   : > { %s153_s26 = scalar_lea.vmem (%p43_p3), %s644_s0, %s457_s22  ;;  %s148_s27 = scalar_lea.vmem (%p43_p3), [#allocation3], %s456_s23 }
   0xf   : > { %v196_v0 = vld [vmem:[%s153_s26] sm:$0xff] (%p43_p3)  ;;  %v198_v1 = vld [vmem:[%s153_s26 + $0x10] sm:$0xff] (%p43_p3) }
  0x10   : > { %v200_v2 = vld [vmem:[%s153_s26 + $0x20] sm:$0xff] (%p43_p3)  ;;  %197 = vst [vmem:[%s148_s27] sm:$0xff] (%p43_p3), %v196_v0  ;;  %v202_v3 = vld [vmem:[%s153_s26 + $0x30] sm:$0xff] (%p43_p3) }
  0x11   : > { %199 = vst [vmem:[%s148_s27 + $0x8] sm:$0xff] %v198_v1  ;;  %v204_v4 = vld [vmem:[%s153_s26 + $0x40] sm:$0xff]  ;;  %v206_v5 = vld [vmem:[%s153_s26 + $0x50] sm:$0xff] }
  0x12   : > { %201 = vst [vmem:[%s148_s27 + $0x10] sm:$0xff] %v200_v2  ;;  %v208_v6 = vld [vmem:[%s153_s26 + $0x60] sm:$0xff]  ;;  %v210_v7 = vld [vmem:[%s153_s26 + $0x70] sm:$0xff] }
  0x13   : > { %203 = vst [vmem:[%s148_s27 + $0x18] sm:$0xff] %v202_v3 }
  0x14   : > { %205 = vst [vmem:[%s148_s27 + $0x20] sm:$0xff] %v204_v4 }
  0x15   : > { %207 = vst [vmem:[%s148_s27 + $0x28] sm:$0xff] %v206_v5 }
  0x16   : > { %209 = vst [vmem:[%s148_s27 + $0x30] sm:$0xff] %v208_v6 }
  0x17   : > { %211 = vst [vmem:[%s148_s27 + $0x38] sm:$0xff] %v210_v7 }
  0x18 PF: > { %p458_p6 = scmp.ge.s32.totalorder %s546_s16, 1  ;;  %p216_p7 = scmp.lt.s32.totalorder %s546_s16, 3 }
  0x1a   : > { %p217_p8 = pnand %p458_p6, %p216_p7 }
  0x1b   : > { %s223_s28 = sand.u32 (!%p217_p8), 1, %s530_s12   ;;  %p460_p9 = scmp.ne.s32.totalorder (!%p217_p8), %s538_s14, 0 }
  0x1c   : > { %220 = sbr.rel (%p217_p8) target bundleno = 209 (0xd1), region = 66  ;;  %s459_s29 = sshll.u32 (!%p217_p8), %s223_s28, 6 }
  0x1d   : > { %s225_s30 = scalar_lea.vmem (!%p217_p8), [#allocation3], %s459_s29 }
  0x21   : > { %253 = sbr.rel (%p460_p9) target bundleno = 40 (0x28), region = 74 }
  0x26   : > { %v548_v8 = vmov 0.0  }
  0x27   : > { %254 = vst [vmem:[#allocation2] sm:$0xff] %v548_v8 }
  0x28 PF: > { %v263_v9 = vlaneseq  ;;  %s461_s4 = sshll.u32 %s538_s14, 3  ;;  %v255_v12 = vld [vmem:[%s225_s30] sm:$0xff]  ;;  %v256_v13 = vld [vmem:[%s225_s30 + $0x8] sm:$0xff]  ;;  %v257_v14 = vld [vmem:[%s225_s30 + $0x10] sm:$0xff]  ;;  %vm336_vm1 = vcmask 1041409   ;;  %vm338_vm2 = vcmask 1042434  }
  0x29   : > { %v266_v10 = vstv %s461_s4  ;;  %v258_v15 = vld [vmem:[%s225_s30 + $0x18] sm:$0xff]  ;;  %v259_v16 = vld [vmem:[%s225_s30 + $0x20] sm:$0xff]  ;;  %v260_v18 = vld [vmem:[%s225_s30 + $0x28] sm:$0xff]  ;;  %vm340_vm3 = vcmask 1043459   ;;  %vm342_vm4 = vcmask 1044484   ;;  %vm344_vm5 = vcmask 1045509  }
  0x2a   : > { %v264_v11 = vshrl.u32 %v263_v9, 7  ;;  %v261_v19 = vld [vmem:[%s225_s30 + $0x30] sm:$0xff]  ;;  %v262_v20 = vld [vmem:[%s225_s30 + $0x38] sm:$0xff]  ;;  %vm346_vm6 = vcmask 1046534   ;;  %vm348_vm7 = vcmask 1047559   ;;  %p462_p10 = scmp.ne.s32.totalorder %s538_s14, 1 }
  0x2c   : > { %v267_v17 = vadd.s32 %v266_v10, %v264_v11 }
  0x2e   : > { %vm268_vm0 = vcmp.lt.s32.totalorder %v267_v17, 15  ;;  %v279_v17 = vld [vmem:[#allocation2] sm:$0xff] }
  0x2f   : > { %v271_v21 = vsel %vm268_vm0, %v255_v12, 0.0  ;;  %v272_v22 = vsel %vm268_vm0, %v256_v13, 0.0  ;;  %v273_v23 = vsel %vm268_vm0, %v257_v14, 0.0  ;;  %v274_v24 = vsel %vm268_vm0, %v258_v15, 0.0 }
  0x30   : > { %v275_v25 = vsel %vm268_vm0, %v259_v16, 0.0  ;;  %v276_v26 = vsel %vm268_vm0, %v260_v18, 0.0  ;;  %v277_v27 = vsel %vm268_vm0, %v261_v19, 0.0  ;;  %v278_v28 = vsel %vm268_vm0, %v262_v20, 0.0 }
  0x31   : > { %v280_v29 = vrot.slane %v271_v21, 4  ;;  %v286_v30 = vrot.slane %v272_v22, 4  ;;  %v292_v31 = vrot.slane %v273_v23, 4  ;;  %v298_v32 = vrot.slane %v274_v24, 4 }
  0x32   : > { %v304_v33 = vrot.slane %v275_v25, 4  ;;  %v310_v34 = vrot.slane %v276_v26, 4  ;;  %v316_v35 = vrot.slane %v277_v27, 4  ;;  %v322_v36 = vrot.slane %v278_v28, 4 }
  0x33   : > { %v281_v37 = vadd.f32 %v280_v29, %v271_v21  ;;  %v287_v38 = vadd.f32 %v286_v30, %v272_v22  ;;  %v293_v39 = vadd.f32 %v292_v31, %v273_v23  ;;  %v299_v40 = vadd.f32 %v298_v32, %v274_v24 }
  0x34   : > { %v305_v41 = vadd.f32 %v304_v33, %v275_v25  ;;  %v311_v42 = vadd.f32 %v310_v34, %v276_v26  ;;  %v317_v43 = vadd.f32 %v316_v35, %v277_v27  ;;  %v323_v44 = vadd.f32 %v322_v36, %v278_v28 }
  0x35   : > { %v282_v45 = vrot.slane %v281_v37, 2  ;;  %v288_v46 = vrot.slane %v287_v38, 2  ;;  %v294_v47 = vrot.slane %v293_v39, 2  ;;  %v300_v48 = vrot.slane %v299_v40, 2 }
  0x36   : > { %v306_v49 = vrot.slane %v305_v41, 2  ;;  %v312_v50 = vrot.slane %v311_v42, 2  ;;  %v318_v51 = vrot.slane %v317_v43, 2  ;;  %v324_v52 = vrot.slane %v323_v44, 2 }
  0x37   : > { %v283_v53 = vadd.f32 %v282_v45, %v281_v37  ;;  %v289_v54 = vadd.f32 %v288_v46, %v287_v38  ;;  %v295_v55 = vadd.f32 %v294_v47, %v293_v39  ;;  %v301_v56 = vadd.f32 %v300_v48, %v299_v40 }
  0x38   : > { %v307_v57 = vadd.f32 %v306_v49, %v305_v41  ;;  %v313_v58 = vadd.f32 %v312_v50, %v311_v42  ;;  %v319_v59 = vadd.f32 %v318_v51, %v317_v43  ;;  %v325_v60 = vadd.f32 %v324_v52, %v323_v44 }
  0x39   : > { %v284_v61 = vrot.slane %v283_v53, 1  ;;  %v290_v62 = vrot.slane %v289_v54, 1  ;;  %v296_v63 = vrot.slane %v295_v55, 1  ;;  %v302_v0 = vrot.slane %v301_v56, 1 }
  0x3a   : > { %v308_v1 = vrot.slane %v307_v57, 1  ;;  %v314_v2 = vrot.slane %v313_v58, 1  ;;  %v320_v3 = vrot.slane %v319_v59, 1  ;;  %v326_v4 = vrot.slane %v325_v60, 1 }
  0x3b   : > { %v285_v5 = vadd.f32 %v284_v61, %v283_v53  ;;  %v291_v6 = vadd.f32 %v290_v62, %v289_v54  ;;  %v297_v7 = vadd.f32 %v296_v63, %v295_v55  ;;  %v303_v8 = vadd.f32 %v302_v0, %v301_v56 }
  0x3c   : > { %v309_v9 = vadd.f32 %v308_v1, %v307_v57  ;;  %v315_v10 = vadd.f32 %v314_v2, %v313_v58  ;;  %v321_v12 = vadd.f32 %v320_v3, %v319_v59  ;;  %v327_v14 = vadd.f32 %v326_v4, %v325_v60 }
  0x3d   : > { %v337_v11 = vsel %vm336_vm1, %v291_v6, %v285_v5 }
  0x3e   : > { %v339_v13 = vsel %vm338_vm2, %v297_v7, %v337_v11 }
  0x3f   : > { %v341_v15 = vsel %vm340_vm3, %v303_v8, %v339_v13 }
  0x40   : > { %v343_v16 = vsel %vm342_vm4, %v309_v9, %v341_v15 }
  0x41   : > { %v345_v18 = vsel %vm344_vm5, %v315_v10, %v343_v16 }
  0x42   : > { %v347_v19 = vsel %vm346_vm6, %v321_v12, %v345_v18  ;;  %356 = sbr.rel (%p462_p10) target bundleno = 209 (0xd1), region = 78 }
  0x43   : > { %v349_v20 = vsel %vm348_vm7, %v327_v14, %v347_v19 }
  0x44   : > { %v351_v21 = vadd.f32 %v349_v20, %v279_v17 }
  0x46   : > { %352 = vst [vmem:[#allocation2] sm:$0xff] %v351_v21 }
  0x47   : > { %v358_v22 = vld [vmem:[%s645_s1] sm:$0xf]  ;;  %vm384_vm8 = vcmask 31744  }
  0x48   : > { %378 = vmatpush.xpose.msra.mxu0 %v358_v22  ;;  %v507_v24 = vld [vmem:[%s646_s2] ss:$0 sm:$0xff] }
  0x4d   : > { %v357_v23 = vld [vmem:[#allocation2] sm:$0xff] }
  0x4e   : > { %379 = vmatmul.f32.vlgmr.msra.gmra.mxu0 %v357_v23 }
  0xcb   : > { %v380_v25 = vpop.f32.mrf.mxu0 }
  0xcc   : > { %v381_v26 = vadd.f32 %v507_v24, %v380_v25 }
  0xce   : > { %v383_v27 = vmax.f32 %v381_v26, 0.0 }
  0xd0   : > { %385 = vst.msk [vmem:[%s647_s3] sm:$0xff] %vm384_vm8, %v383_v27 }
  0xd1 PF: > { %s13_s16 = sadd.s32 1, %s546_s16   ;;  %s648_s12 = smov %s534_s13 }
  0xd2   : > { %p10_p11 = scmp.ge.s32.totalorder %s13_s16, 4   ;;  %s649_s13 = smov %s604_s20 }
  0xd3   : > { %s650_s14 = smov %s542_s15  ;;  %s651_s15 = smov %s653_s17 }
  0xd4   :  { %12 = sbr.rel (!%p10_p11) target bundleno = 3 (0x3), region = 113 }

</bundles_post_ra>
